<compile_context>
chip_gen: v6e
topology: v6e:2x2x1
jax: 0.10.0
libtpu: 0.0.40
codegen_flags: <defaults>
</compile_context>

<pallas_src>
import functools
import math

import jax
import jax.numpy as jnp
from jax.experimental import pallas as pl
from jax.experimental.pallas import tpu as pltpu

PI = 3.14159265359
MU = 2.0
SIGMA = 4.0
EPS = 1e-6
NPAD = 128  # lane-width padding for the point arrays

_GAUSS_NORM = 1.0 / (SIGMA * math.sqrt(2.0 * PI))
_INV_SIGMA = 1.0 / SIGMA


def _loss_kernel(cam_ref, pts_ref, out_ref, *, n_valid):
    # ---- scalar params (SMEM): camera xy + cos/sin of yaw ----
    cx = cam_ref[0]
    cy = cam_ref[1]
    c = cam_ref[2]
    s = cam_ref[3]

    # FOV triangle vertices: rot(yaw) @ [(0,0), (2,7), (-2,7)]^T + (cx, cy)
    # (pure scalar FMAs on the scalar core — hidden under the VMEM input DMA)
    v0x = cx
    v0y = cy
    v1x = 2.0 * c - 7.0 * s + cx
    v1y = 2.0 * s + 7.0 * c + cy
    v2x = -2.0 * c - 7.0 * s + cx
    v2y = -2.0 * s + 7.0 * c + cy

    # ---- packed points: sublane 0 = x, sublane 1 = y ----
    pts = pts_ref[...]            # (8, NPAD)
    px = pts[0:1, :]              # (1, NPAD)
    py = pts[1:2, :]              # (1, NPAD)

    # validity mask built in-kernel (n_valid is a static Python int)
    valid = jax.lax.broadcasted_iota(jnp.int32, (1, NPAD), 1) < n_valid

    # ---- distance criterion: 1 / (sum(gaussian(||cam_xy - p||)) + eps) ----
    dx = cx - px
    dy = cy - py
    dist = jnp.sqrt(dx * dx + dy * dy)
    z = (dist - MU) * _INV_SIGMA
    g = jnp.exp(-0.5 * (z * z)) * _GAUSS_NORM
    g = jnp.where(valid, g, 0.0)                                # (1, NPAD)

    # ---- fov criterion: count points strictly inside the visibility triangle ----
    # strict point-in-triangle via signed edge cross products (boundary excluded,
    # matching shapely Polygon.contains semantics used by the reference module)
    d0 = (v1x - v0x) * (py - v0y) - (v1y - v0y) * (px - v0x)
    d1 = (v2x - v1x) * (py - v1y) - (v2y - v1y) * (px - v1x)
    d2 = (v0x - v2x) * (py - v2y) - (v0y - v2y) * (px - v2x)
    all_pos = (d0 > 0.0) & (d1 > 0.0) & (d2 > 0.0)
    all_neg = (d0 < 0.0) & (d1 < 0.0) & (d2 < 0.0)
    inside = jnp.where((all_pos | all_neg) & valid, 1.0, 0.0)   # (1, NPAD)

    # ---- merged reduction: one XLU lane pass over a (2, NPAD) operand ----
    both = jnp.concatenate([g, inside], axis=0)                 # (2, NPAD)
    sums = jnp.sum(both, axis=-1, keepdims=True)                # (2, 1)
    inv = 1.0 / (sums + EPS)                                    # (2, 1)

    # scalar loss -> SMEM output (loss_dist + loss_fov)
    out_ref[0, 0] = jnp.sum(inv)


def camera_pose_loss(camera_xy_yaw, points):
    """camera_xy_yaw: (3,) f32 [x, y, yaw]; points: (N, 2) f32.  Returns (1,) f32 loss."""
    camera_xy_yaw = camera_xy_yaw.astype(jnp.float32)
    points = points.astype(jnp.float32)
    n = points.shape[0]
    assert n <= NPAD, "kernel supports up to 128 points in a single tile"

    # minimal host glue: [cx, cy, cos(yaw), sin(yaw)] scalars + one static pad/transpose
    yaw = camera_xy_yaw[2]
    params = jnp.stack(
        [camera_xy_yaw[0], camera_xy_yaw[1], jnp.cos(yaw), jnp.sin(yaw)]
    ).astype(jnp.float32)                                        # (4,)

    pts_packed = jnp.pad(points.T, ((0, 8 - 2), (0, NPAD - n)))  # (8, NPAD)

    kernel = functools.partial(_loss_kernel, n_valid=n)

    out = pl.pallas_call(
        kernel,
        out_shape=jax.ShapeDtypeStruct((1, 1), jnp.float32),
        in_specs=[
            pl.BlockSpec(memory_space=pltpu.MemorySpace.SMEM),   # scalar params
            pl.BlockSpec(memory_space=pltpu.MemorySpace.VMEM),   # packed points
        ],
        out_specs=pl.BlockSpec(memory_space=pltpu.MemorySpace.SMEM),
    )(params, pts_packed)

    return out.reshape(1)   # matches the torch loss shape (1,)


def _reference_loss(camera_xy_yaw, points):
    """Pure JAX reference (mirrors the PyTorch Model.forward)."""
    cam = camera_xy_yaw.astype(jnp.float32)
    pts = points.astype(jnp.float32)
    dists = jnp.linalg.norm(cam[:2] - pts, axis=1)
    g = jnp.exp(-0.5 * ((dists - MU) / SIGMA) ** 2) / (SIGMA * jnp.sqrt(2 * PI))
    loss_dist = 1.0 / (jnp.sum(g) + EPS)

    yaw = cam[2]
    c, s = jnp.cos(yaw), jnp.sin(yaw)
    rot = jnp.array([[c, -s], [s, c]])
    polygon = jnp.array([[0.0, 0.0], [2.0, 7.0], [-2.0, 7.0]], dtype=jnp.float32)
    verts = (rot @ polygon.T).T + cam[:2]
    v0, v1, v2 = verts[0], verts[1], verts[2]

    def cross(a, b, p):
        return (b[0] - a[0]) * (p[:, 1] - a[1]) - (b[1] - a[1]) * (p[:, 0] - a[0])

    d0, d1, d2 = cross(v0, v1, pts), cross(v1, v2, pts), cross(v2, v0, pts)
    inside = ((d0 > 0) & (d1 > 0) & (d2 > 0)) | ((d0 < 0) & (d1 < 0) & (d2 < 0))
    reward = jnp.sum(inside.astype(jnp.float32))
    loss_fov = 1.0 / (reward + EPS)
    return jnp.reshape(loss_dist + loss_fov, (1,))


if __name__ == "__main__":
    key = jax.random.PRNGKey(0)
    k_pts, _ = jax.random.split(key)

    # small deterministic problem: 8 points scattered around the FOV triangle
    n_points = 8
    points = jax.random.uniform(k_pts, (n_points, 2), jnp.float32,
                                minval=-4.0, maxval=8.0)
    x0, y0, yaw0 = 0.5, -1.0, 0.3
    camera_xy_yaw = jnp.array([x0, y0, yaw0], dtype=jnp.float32)

    loss = jax.block_until_ready(camera_pose_loss(camera_xy_yaw, points))
    ref = jax.block_until_ready(_reference_loss(camera_xy_yaw, points))

    assert loss.shape == (1,)
    assert jnp.allclose(loss, ref, rtol=1e-5, atol=1e-5), (loss, ref)
    print("KERNEL_OK")
</pallas_src>

<mosaic_0001>
module attributes {stable_mosaic.version = 11 : i64} {
  func.func @_loss_kernel(%arg0: memref<4xf32, #tpu.memory_space<smem>>, %arg1: memref<8x128xf32, #tpu.memory_space<vmem>>, %arg2: memref<1x1xf32, #tpu.memory_space<smem>>) attributes {dimension_semantics = [], scalar_prefetch = 0 : i64, scratch_operands = 0 : i64, tpu.core_type = #tpu.core_type<tc>} {
    %c0 = arith.constant 0 : index
    %0 = memref.load %arg0[%c0] : memref<4xf32, #tpu.memory_space<smem>>
    %c1 = arith.constant 1 : index
    %1 = memref.load %arg0[%c1] : memref<4xf32, #tpu.memory_space<smem>>
    %c2 = arith.constant 2 : index
    %2 = memref.load %arg0[%c2] : memref<4xf32, #tpu.memory_space<smem>>
    %c3 = arith.constant 3 : index
    %3 = memref.load %arg0[%c3] : memref<4xf32, #tpu.memory_space<smem>>
    %cst = arith.constant 2.000000e+00 : f32
    %4 = arith.mulf %cst, %2 : f32
    %cst_0 = arith.constant 7.000000e+00 : f32
    %5 = arith.mulf %cst_0, %3 : f32
    %6 = arith.subf %4, %5 : f32
    %7 = arith.addf %6, %0 : f32
    %cst_1 = arith.constant 2.000000e+00 : f32
    %8 = arith.mulf %cst_1, %3 : f32
    %cst_2 = arith.constant 7.000000e+00 : f32
    %9 = arith.mulf %cst_2, %2 : f32
    %10 = arith.addf %8, %9 : f32
    %11 = arith.addf %10, %1 : f32
    %cst_3 = arith.constant -2.000000e+00 : f32
    %12 = arith.mulf %cst_3, %2 : f32
    %cst_4 = arith.constant 7.000000e+00 : f32
    %13 = arith.mulf %cst_4, %3 : f32
    %14 = arith.subf %12, %13 : f32
    %15 = arith.addf %14, %0 : f32
    %cst_5 = arith.constant -2.000000e+00 : f32
    %16 = arith.mulf %cst_5, %3 : f32
    %cst_6 = arith.constant 7.000000e+00 : f32
    %17 = arith.mulf %cst_6, %2 : f32
    %18 = arith.addf %16, %17 : f32
    %19 = arith.addf %18, %1 : f32
    %c0_7 = arith.constant 0 : index
    %c0_8 = arith.constant 0 : index
    %20 = vector.load %arg1[%c0_7, %c0_8] : memref<8x128xf32, #tpu.memory_space<vmem>>, vector<8x128xf32>
    %21 = vector.extract_strided_slice %20 {offsets = [0, 0], sizes = [1, 128], strides = [1, 1]} : vector<8x128xf32> to vector<1x128xf32>
    %22 = vector.extract_strided_slice %20 {offsets = [1, 0], sizes = [1, 128], strides = [1, 1]} : vector<8x128xf32> to vector<1x128xf32>
    %23 = tpu.iota {dimensions = array<i32: 1>} : vector<1x128xi32>
    %c8_i32 = arith.constant 8 : i32
    %24 = vector.broadcast %c8_i32 : i32 to vector<1x128xi32>
    %25 = arith.cmpi slt, %23, %24 : vector<1x128xi32>
    %26 = vector.broadcast %0 : f32 to vector<1x128xf32>
    %27 = arith.subf %26, %21 : vector<1x128xf32>
    %28 = vector.broadcast %1 : f32 to vector<1x128xf32>
    %29 = arith.subf %28, %22 : vector<1x128xf32>
    %30 = arith.mulf %27, %27 : vector<1x128xf32>
    %31 = arith.mulf %29, %29 : vector<1x128xf32>
    %32 = arith.addf %30, %31 : vector<1x128xf32>
    %33 = math.sqrt %32 : vector<1x128xf32>
    %cst_9 = arith.constant 2.000000e+00 : f32
    %34 = vector.broadcast %cst_9 : f32 to vector<1x128xf32>
    %35 = arith.subf %33, %34 : vector<1x128xf32>
    %cst_10 = arith.constant 2.500000e-01 : f32
    %36 = vector.broadcast %cst_10 : f32 to vector<1x128xf32>
    %37 = arith.mulf %35, %36 : vector<1x128xf32>
    %38 = arith.mulf %37, %37 : vector<1x128xf32>
    %cst_11 = arith.constant -5.000000e-01 : f32
    %39 = vector.broadcast %cst_11 : f32 to vector<1x128xf32>
    %40 = arith.mulf %39, %38 : vector<1x128xf32>
    %41 = math.exp %40 : vector<1x128xf32>
    %cst_12 = arith.constant 0.0997355729 : f32
    %42 = vector.broadcast %cst_12 : f32 to vector<1x128xf32>
    %43 = arith.mulf %41, %42 : vector<1x128xf32>
    %cst_13 = arith.constant 0.000000e+00 : f32
    %44 = vector.broadcast %cst_13 : f32 to vector<1x128xf32>
    %45 = arith.select %25, %43, %44 : vector<1x128xi1>, vector<1x128xf32>
    %46 = arith.subf %7, %0 : f32
    %47 = vector.broadcast %1 : f32 to vector<1x128xf32>
    %48 = arith.subf %22, %47 : vector<1x128xf32>
    %49 = vector.broadcast %46 : f32 to vector<1x128xf32>
    %50 = arith.mulf %49, %48 : vector<1x128xf32>
    %51 = arith.subf %11, %1 : f32
    %52 = vector.broadcast %0 : f32 to vector<1x128xf32>
    %53 = arith.subf %21, %52 : vector<1x128xf32>
    %54 = vector.broadcast %51 : f32 to vector<1x128xf32>
    %55 = arith.mulf %54, %53 : vector<1x128xf32>
    %56 = arith.subf %50, %55 : vector<1x128xf32>
    %57 = arith.subf %15, %7 : f32
    %58 = vector.broadcast %11 : f32 to vector<1x128xf32>
    %59 = arith.subf %22, %58 : vector<1x128xf32>
    %60 = vector.broadcast %57 : f32 to vector<1x128xf32>
    %61 = arith.mulf %60, %59 : vector<1x128xf32>
    %62 = arith.subf %19, %11 : f32
    %63 = vector.broadcast %7 : f32 to vector<1x128xf32>
    %64 = arith.subf %21, %63 : vector<1x128xf32>
    %65 = vector.broadcast %62 : f32 to vector<1x128xf32>
    %66 = arith.mulf %65, %64 : vector<1x128xf32>
    %67 = arith.subf %61, %66 : vector<1x128xf32>
    %68 = arith.subf %0, %15 : f32
    %69 = vector.broadcast %19 : f32 to vector<1x128xf32>
    %70 = arith.subf %22, %69 : vector<1x128xf32>
    %71 = vector.broadcast %68 : f32 to vector<1x128xf32>
    %72 = arith.mulf %71, %70 : vector<1x128xf32>
    %73 = arith.subf %1, %19 : f32
    %74 = vector.broadcast %15 : f32 to vector<1x128xf32>
    %75 = arith.subf %21, %74 : vector<1x128xf32>
    %76 = vector.broadcast %73 : f32 to vector<1x128xf32>
    %77 = arith.mulf %76, %75 : vector<1x128xf32>
    %78 = arith.subf %72, %77 : vector<1x128xf32>
    %cst_14 = arith.constant 0.000000e+00 : f32
    %79 = vector.broadcast %cst_14 : f32 to vector<1x128xf32>
    %80 = arith.cmpf ogt, %56, %79 : vector<1x128xf32>
    %cst_15 = arith.constant 0.000000e+00 : f32
    %81 = vector.broadcast %cst_15 : f32 to vector<1x128xf32>
    %82 = arith.cmpf ogt, %67, %81 : vector<1x128xf32>
    %83 = arith.andi %80, %82 : vector<1x128xi1>
    %cst_16 = arith.constant 0.000000e+00 : f32
    %84 = vector.broadcast %cst_16 : f32 to vector<1x128xf32>
    %85 = arith.cmpf ogt, %78, %84 : vector<1x128xf32>
    %86 = arith.andi %83, %85 : vector<1x128xi1>
    %cst_17 = arith.constant 0.000000e+00 : f32
    %87 = vector.broadcast %cst_17 : f32 to vector<1x128xf32>
    %88 = arith.cmpf olt, %56, %87 : vector<1x128xf32>
    %cst_18 = arith.constant 0.000000e+00 : f32
    %89 = vector.broadcast %cst_18 : f32 to vector<1x128xf32>
    %90 = arith.cmpf olt, %67, %89 : vector<1x128xf32>
    %91 = arith.andi %88, %90 : vector<1x128xi1>
    %cst_19 = arith.constant 0.000000e+00 : f32
    %92 = vector.broadcast %cst_19 : f32 to vector<1x128xf32>
    %93 = arith.cmpf olt, %78, %92 : vector<1x128xf32>
    %94 = arith.andi %91, %93 : vector<1x128xi1>
    %95 = arith.ori %86, %94 : vector<1x128xi1>
    %96 = arith.andi %95, %25 : vector<1x128xi1>
    %cst_20 = arith.constant 1.000000e+00 : f32
    %cst_21 = arith.constant 0.000000e+00 : f32
    %97 = vector.broadcast %cst_20 : f32 to vector<1x128xf32>
    %98 = vector.broadcast %cst_21 : f32 to vector<1x128xf32>
    %99 = arith.select %96, %97, %98 : vector<1x128xi1>, vector<1x128xf32>
    %100 = tpu.concatenate %45, %99 in 0 : vector<1x128xf32>, vector<1x128xf32> -> vector<2x128xf32>
    %cst_22 = arith.constant dense<0.000000e+00> : vector<2xf32>
    %101 = vector.multi_reduction <add>, %100, %cst_22 [1] : vector<2x128xf32> to vector<2xf32>
    %102 = vector.shape_cast %101 : vector<2xf32> to vector<2x1xf32>
    %cst_23 = arith.constant 9.99999997E-7 : f32
    %103 = vector.broadcast %cst_23 : f32 to vector<2x1xf32>
    %104 = arith.addf %102, %103 : vector<2x1xf32>
    %cst_24 = arith.constant 1.000000e+00 : f32
    %105 = vector.broadcast %cst_24 : f32 to vector<2x1xf32>
    %106 = arith.divf %105, %104 : vector<2x1xf32>
    %107 = vector.shape_cast %106 : vector<2x1xf32> to vector<1x2x1xf32>
    %cst_25 = arith.constant dense<0.000000e+00> : vector<1xf32>
    %108 = vector.multi_reduction <add>, %107, %cst_25 [1, 2] : vector<1x2x1xf32> to vector<1xf32>
    %109 = vector.shape_cast %108 : vector<1xf32> to vector<1x1x1xf32>
    %110 = vector.extract %109[0, 0, 0] : f32 from vector<1x1x1xf32>
    %c0_26 = arith.constant 0 : index
    %c0_27 = arith.constant 0 : index
    %111 = memref.load %arg2[%c0_26, %c0_27] : memref<1x1xf32, #tpu.memory_space<smem>>
    memref.store %110, %arg2[%c0_26, %c0_27] : memref<1x1xf32, #tpu.memory_space<smem>>
    return
  }
}

</mosaic_0001>

<bundles_post_ra>
// kernel: tpu_custom_call.1
= control target key start
LH: loop header
LB: loop body
LE: loop exit
PB: predicated region body
PF: predicated region fallthrough
CT: control target
= control target key end

     0   :  { %7 = vsyncpa [#allocation4], 0  ;;  %s282_s0 = inlined_call_operand.hbm [shape: f32[4], index: 0, kind: input, shape index: {}]   ;;  %s283_s1 = inlined_call_operand.hbm [shape: f32[8,128], index: 1, kind: input, shape index: {}]   ;;  %s284_s2 = inlined_call_operand.hbm [shape: f32[1,1], index: 2, kind: output, shape index: {}]  }
   0x1   :  { %8 = vsyncpa [#allocation3], 0 }
   0x2   :  { %9 = vsyncpa [#allocation5], 0  ;;  %s230_s9 = smov [#allocation2]   ;;  %s231_s12 = smov [#allocation6]  }
   0x3   :  { %17 = dma.hbm_to_smem %s282_s0, 16, %s230_s9, [#allocation4]  }
   0x4   :  { %s24_s13 = sshll.u32 %s231_s12, 4  ;;  %s25_s13 = int_to_ptr.vmem [resolvable:$true] %s24_s13 }
   0x5   :  { %s204_s14 = scalar_lea.vmem %s25_s13, 128  ;;  %p209_p1 = scmp.lt.s32.totalorder %s25_s13, %s25_s13 }
   0x6   :  { %p205_p0 = scmp.ne.s32.totalorder %s25_s13, %s204_s14  ;;  %p210_p2 = scmp.lt.s32.totalorder %s204_s14, %s204_s14 }
   0x8   :  { %p211_p3 = por %p210_p2, %p209_p1 }
   0xa   :  { %p212_p4 = pnand %p211_p3, %p205_p0 }
   0xc   :  { %215 = shalt.err (!%p212_p4)
}
   0xd   :  { %27 = dma.hbm_to_vmem [thread:$0]  %s283_s1, 128, %s25_s13, [#allocation3]  }
   0xe   :  { %224 = dma.done.wait [#allocation4], 16  }
   0xf   :  { %225 = vsyncadd [#allocation4], 4294967280 }
  0x10   :  { %226 = dma.done.wait [#allocation3], 128  }
  0x11   :  { %227 = vsyncadd [#allocation3], 4294967168 }
  0x12   :  { %34 = sfence }
  0x13   :  { %s255_s0 = sld [smem:[#allocation2]]  ;;  %v53_v0 = vld [vmem:[#allocation6] sm:$0xff]  ;;  %v54_v47 = vlaneseq  ;;  %v232_v51 = vmov 0.0   ;;  %vm135_vm15 = vcmask 1040384   ;;  %s233_s12 = smov [#allocation7]  }
  0x14   :  { %s257_s17 = sld [smem:[#allocation2 + $0x1]] }
  0x15   :  { %s173_s18 = sld [smem:[#allocation2 + $0x2]]  ;;  %v55_v48 = vand.u32 127, %v54_v47 }
  0x16   :  { %s174_s19 = sld [smem:[#allocation2 + $0x3]] }
  0x17   :  { %vm56_vm12 = vcmp.lt.s32.totalorder %v55_v48, 8 }
  0x19   :  { %v57_v1 = vstv %s255_s0 }
  0x1a   :  { %v58_v2 = vsub.f32 %v57_v1, %v53_v0  ;;  %v59_v3 = vstv %s257_s17  ;;  %v87_v10 = vsub.f32 %v53_v0, %v57_v1 }
  0x1b   :  { %s39_s20 = smul.f32 2.0, %s173_s18  ;;  %v60_v4 = vsub.f32 %v59_v3, %v53_v0  ;;  %v83_v15 = vsub.f32 %v53_v0, %v59_v3 }
  0x1c   :  { %s40_s1 = smul.f32 7.0, %s174_s19  ;;  %v61_v5 = vmul.f32 %v58_v2, %v58_v2 }
  0x1d   :  { %s43_s21 = smul.f32 2.0, %s174_s19  ;;  %v62_v6 = vmul.f32 %v60_v4, %v60_v4 }
  0x1e   :  { %s44_s22 = smul.f32 7.0, %s173_s18  ;;  %s41_s26 = ssub.f32 %s39_s20, %s40_s1 }
  0x1f   :  { %s47_s23 = smul.f32 -2.0, %s173_s18  ;;  %v64_v7 = vrot.slane %v62_v6, 1 }
  0x20   :  { %s45_s24 = sadd.f32 %s44_s22, %s43_s21  ;;  %s50_s25 = smul.f32 -2.0, %s174_s19 }
  0x21   :  { %v66_v8 = vadd.f32 %v64_v7, %v61_v5  ;;  %s48_s27 = ssub.f32 %s47_s23, %s40_s1 }
  0x22   :  { %s46_s28 = sadd.f32 %s257_s17, %s45_s24 }
  0x23   :  { %182 = vrsqrt.f32 %v66_v8  ;;  %s51_s29 = sadd.f32 %s50_s25, %s44_s22  ;;  %vm69_vm0 = vcmp.eq.f32.partialorder %v66_v8, inf  ;;  %vm71_vm1 = vcmp.eq.f32.partialorder %v66_v8, 0.0  ;;  %v72_v17 = vand.u32 2147483648, %v66_v8 }
  0x24   :  { %s42_s30 = sadd.f32 %s41_s26, %s255_s0  ;;  %v95_v11 = vstv %s46_s28 }
  0x25   :  { %s264_s3 = sadd.f32 %s257_s17, %s51_s29  ;;  %v96_v18 = vsub.f32 %v53_v0, %v95_v11 }
  0x26   :  { %s267_s4 = sadd.f32 %s48_s27, %s255_s0  ;;  %v100_v9 = vstv %s42_s30 }
  0x27   :  { %s86_s5 = ssub.f32 %s46_s28, %s257_s17  ;;  %v101_v13 = vsub.f32 %v53_v0, %v100_v9  ;;  %v109_v22 = vstv %s264_s3 }
  0x28   :  { %s99_s6 = ssub.f32 %s264_s3, %s46_s28  ;;  %v114_v14 = vstv %s267_s4  ;;  %v110_v32 = vsub.f32 %v53_v0, %v109_v22 }
  0x29   :  { %s82_s7 = ssub.f32 %s42_s30, %s255_s0  ;;  %v88_v12 = vstv %s86_s5  ;;  %v115_v23 = vsub.f32 %v53_v0, %v114_v14 }
  0x2a   :  { %s94_s8 = ssub.f32 %s267_s4, %s42_s30  ;;  %v102_v16 = vstv %s99_s6  ;;  %v89_v21 = vmul.f32 %v88_v12, %v87_v10 }
  0x2b   :  { %s113_s9 = ssub.f32 %s257_s17, %s264_s3  ;;  %v84_v20 = vstv %s82_s7  ;;  %v103_v26 = vmul.f32 %v102_v16, %v101_v13 }
  0x2c   :  { %v97_v25 = vstv %s94_s8  ;;  %s108_s10 = ssub.f32 %s255_s0, %s267_s4  ;;  %v85_v29 = vmul.f32 %v84_v20, %v83_v15  ;;  %v91_v35 = vrot.slane %v89_v21, 7 }
  0x2d   :  { %v116_v27 = vstv %s113_s9  ;;  %v98_v31 = vmul.f32 %v97_v25, %v96_v18  ;;  %v105_v36 = vrot.slane %v103_v26, 7 }
  0x2e   :  { %v117_v33 = vmul.f32 %v116_v27, %v115_v23  ;;  %v111_v37 = vstv %s108_s10  ;;  %v93_v42 = vsub.f32 %v85_v29, %v91_v35 }
  0x2f   :  { %v112_v39 = vmul.f32 %v111_v37, %v110_v32  ;;  %v107_v43 = vsub.f32 %v98_v31, %v105_v36 }
  0x30   :  { %v183_v19 = vpop.eup %182  ;;  %v119_v40 = vrot.slane %v117_v33, 7  ;;  %vm122_vm2 = vcmp.gt.f32.partialorder %v93_v42, 0.0  ;;  %vm127_vm4 = vcmp.lt.f32.partialorder %v93_v42, 0.0 }
  0x31   :  { %v68_v24 = vmul.f32 %v183_v19, %v66_v8  ;;  %vm123_vm3 = vcmp.gt.f32.partialorder %v107_v43, 0.0  ;;  %vm128_vm5 = vcmp.lt.f32.partialorder %v107_v43, 0.0 }
  0x32   :  { %v121_v45 = vsub.f32 %v112_v39, %v119_v40  ;;  %vm124_vm6 = vmand %vm122_vm2, %vm123_vm3 }
  0x33   :  { %v70_v28 = vsel %vm69_vm0, %v66_v8, %v68_v24  ;;  %vm129_vm8 = vmand %vm127_vm4, %vm128_vm5  ;;  %vm137_vm0 = vcmask 1041408  }
  0x34   :  { %v73_v30 = vsel %vm71_vm1, %v72_v17, %v70_v28  ;;  %vm125_vm7 = vcmp.gt.f32.partialorder %v121_v45, 0.0  ;;  %vm130_vm9 = vcmp.lt.f32.partialorder %v121_v45, 0.0  ;;  %vm144_vm1 = vcmask 1024  }
  0x35   :  { %v175_v34 = vadd.f32 -2.0, %v73_v30  ;;  %vm126_vm10 = vmand %vm124_vm6, %vm125_vm7 }
  0x36   :  { %vm131_vm11 = vmand %vm129_vm8, %vm130_vm9 }
  0x37   :  { %v75_v38 = vmul.f32 0.25, %v175_v34  ;;  %vm132_vm13 = vmor %vm126_vm10, %vm131_vm11 }
  0x38   :  { %vm133_vm14 = vmand %vm132_vm13, %vm56_vm12 }
  0x39   :  { %v76_v41 = vmul.f32 %v75_v38, %v75_v38  ;;  %v134_v52 = vsel %vm133_vm14, 1.0, %v232_v51 }
  0x3b   :  { %v77_v44 = vmul.f32 -0.5, %v76_v41 }
  0x3d   :  { %v78_v46 = vmul.f32 1.442695, %v77_v44 }
  0x3f   :  { %184 = vpow2.f32 %v78_v46 }
  0x4c   :  { %v185_v49 = vpop.eup %184 }
  0x4d   :  { %v80_v50 = vmul.f32 0.09973557, %v185_v49 }
  0x4f   :  { %v81_v53 = vsel %vm56_vm12, %v80_v50, 0.0 }
  0x50   :  { %v136_v54 = vsel %vm135_vm15, %v81_v53, %v134_v52 }
  0x51   :  { %v138_v55 = vsel %vm137_vm0, %v136_v54, 0.0 }
  0x52   :  { %139 = vadd.xlane.f32.xlu0 %v138_v55 }
  0xdb   :  { %v140_v56 = vpop.xlane.xlu0 %139 }
  0xdc   :  { %v141_v57 = vadd.f32 1e-06, %v140_v56 }
  0xde   :  { %186 = vrcp.f32 %v141_v57 }
  0xeb   :  { %v187_v58 = vpop.eup %186 }
  0xec   :  { %v145_v59 = vsel %vm144_vm1, %v187_v58, 0.0 }
  0xed   :  { %146 = vadd.xlane.f32.xlu0 %v145_v59 }
 0x176   :  { %v147_v60 = vpop.xlane.xlu0 %146 }
 0x177   :  { %v148_v61 = vrot.slane %v147_v60, 4 }
 0x179   :  { %v149_v62 = vadd.f32 %v148_v61, %v147_v60 }
 0x17b   :  { %v150_v63 = vrot.slane %v149_v62, 2 }
 0x17d   :  { %v151_v0 = vadd.f32 %v150_v63, %v149_v62 }
 0x17f   :  { %v152_v1 = vrot.slane %v151_v0, 1 }
 0x181   :  { %v153_v2 = vadd.f32 %v152_v1, %v151_v0 }
 0x183   :  { %176 = vpush %v153_v2 }
 0x1b4   :  { %s177_s11 = spop %176 }
 0x1b5   :  { %156 = sst [smem:[#allocation7]] %s177_s11 }
 0x1b6   :  { %164 = dma.smem_to_hbm %s233_s12, 16, %s284_s2, [#allocation5]  }
 0x1b7   :  { %228 = dma.done.wait [#allocation5], 16  }
 0x1b8   :  { %229 = vsyncadd [#allocation5], 4294967280 }
 0x1b9   :  { %168 = sfence }
 0x1ba   :  { %169 = vsyncpa [#allocation3], 1 }
 0x1bb   :  { %170 = vsyncpa [#allocation4], 1 }
 0x1bc   :  { %171 = vsyncpa [#allocation5], 1 }

</bundles_post_ra>
